<compile_context>
chip_gen: v7x
topology: tpu7x:2x2x1
jax: 0.10.0
libtpu: 0.0.40
codegen_flags: <defaults>
</compile_context>

<pallas_src>
import functools

import jax
import jax.numpy as jnp
from jax.experimental import pallas as pl
from jax.experimental.pallas import tpu as pltpu


def generator_kernel(x_ref, w1_ref, b1_ref, w2_ref, b2_ref, o_ref):
    # ---- Linear(z_dim, hidden): bf16 MXU matmul, f32 accumulation, f32 bias ----
    x = x_ref[...].astype(jnp.bfloat16)
    h = jnp.dot(x, w1_ref[...], preferred_element_type=jnp.float32)
    h = h + b1_ref[...]
    # ---- LeakyReLU(0.01), exact, on the VPU ----
    h = jnp.where(h > 0, h, 0.01 * h)
    # ---- Linear(hidden, img_dim) ----
    y = jnp.dot(h.astype(jnp.bfloat16), w2_ref[...],
                preferred_element_type=jnp.float32)
    y = y + b2_ref[...]
    # ---- Tanh on the EUP ----
    o_ref[...] = jnp.tanh(y).astype(o_ref.dtype)


@functools.partial(jax.jit, static_argnames=("block_b",))
def generator_forward(x, w1, b1, w2, b2, *, block_b=256):
    B, z_dim = x.shape
    hidden, img_dim = w2.shape

    # --- lane-pad the output feature dim to a multiple of 128 (784 -> 896) ---
    img_pad = pl.cdiv(img_dim, 128) * 128
    if img_pad != img_dim:
        w2 = jnp.pad(w2, ((0, 0), (0, img_pad - img_dim)))
        b2 = jnp.pad(b2, ((0, 0), (0, img_pad - img_dim)))

    # --- bf16 weights halve HBM weight traffic; biases stay f32 ---
    w1 = w1.astype(jnp.bfloat16)
    w2 = w2.astype(jnp.bfloat16)
    b1 = b1.astype(jnp.float32)
    b2 = b2.astype(jnp.float32)

    # --- batch tiling: tile must be a multiple of 8 sublanes; pad batch to fit ---
    tb = min(block_b, pl.cdiv(B, 8) * 8)
    Bp = pl.cdiv(B, tb) * tb
    if Bp != B:
        x = jnp.pad(x, ((0, Bp - B), (0, 0)))

    grid = (Bp // tb,)

    cost = pl.CostEstimate(
        flops=2 * Bp * (z_dim * hidden + hidden * img_pad),
        transcendentals=Bp * img_pad,
        bytes_accessed=(x.size * 4 + w1.size * 2 + w2.size * 2
                        + b1.size * 4 + b2.size * 4 + Bp * img_pad * 4),
    )

    out = pl.pallas_call(
        generator_kernel,
        out_shape=jax.ShapeDtypeStruct((Bp, img_pad), jnp.float32),
        grid_spec=pltpu.PrefetchScalarGridSpec(
            num_scalar_prefetch=0,
            grid=grid,
            in_specs=[
                pl.BlockSpec((tb, z_dim), lambda i: (i, 0)),        # x: tiled on batch
                pl.BlockSpec((z_dim, hidden), lambda i: (0, 0)),    # w1: VMEM-resident
                pl.BlockSpec((1, hidden), lambda i: (0, 0)),        # b1: VMEM-resident
                pl.BlockSpec((hidden, img_pad), lambda i: (0, 0)),  # w2: VMEM-resident
                pl.BlockSpec((1, img_pad), lambda i: (0, 0)),       # b2: VMEM-resident
            ],
            out_specs=pl.BlockSpec((tb, img_pad), lambda i: (i, 0)),
        ),
        compiler_params=pltpu.CompilerParams(
            dimension_semantics=("parallel",),   # shard batch grid across TCs (v7x)
            vmem_limit_bytes=64 * 1024 * 1024,
        ),
        cost_estimate=cost,
    )(x, w1, b1, w2, b2)

    # Slice away batch / lane padding.
    return out[:B, :img_dim]


def init_params(key, z_dim, hidden, img_dim):
    """Deterministic init mimicking PyTorch nn.Linear's U(-1/sqrt(fan_in), 1/sqrt(fan_in))."""
    k1, k2, k3, k4 = jax.random.split(key, 4)
    bound1 = 1.0 / jnp.sqrt(z_dim)
    bound2 = 1.0 / jnp.sqrt(hidden)
    w1 = jax.random.uniform(k1, (z_dim, hidden), jnp.float32, -bound1, bound1)
    b1 = jax.random.uniform(k2, (1, hidden), jnp.float32, -bound1, bound1)
    w2 = jax.random.uniform(k3, (hidden, img_dim), jnp.float32, -bound2, bound2)
    b2 = jax.random.uniform(k4, (1, img_dim), jnp.float32, -bound2, bound2)
    return w1, b1, w2, b2


def reference_forward(x, w1, b1, w2, b2):
    h = x @ w1 + b1
    h = jnp.where(h > 0, h, 0.01 * h)
    return jnp.tanh(h @ w2 + b2)


if __name__ == "__main__":
    z_dim = 64
    hidden = 256
    img_dim = 784   # 28*28 MNIST image, as in SimpleGAN
    batch = 8

    key = jax.random.PRNGKey(0)
    kx, kp = jax.random.split(key)
    x = jax.random.normal(kx, (batch, z_dim), dtype=jnp.float32)
    w1, b1, w2, b2 = init_params(kp, z_dim, hidden, img_dim)

    out = generator_forward(x, w1, b1, w2, b2)
    out = jax.block_until_ready(out)

    ref = reference_forward(x, w1, b1, w2, b2)
    assert out.shape == (batch, img_dim)
    # bf16 weights -> slightly looser tolerance vs the f32 reference
    # (tanh-bounded output keeps the error small).
    err = float(jnp.max(jnp.abs(out - ref)))
    assert jnp.allclose(out, ref, atol=3e-2, rtol=3e-2), err

    print("KERNEL_OK")
</pallas_src>

<mosaic_0001>
module attributes {stable_mosaic.version = 11 : i64} {
  func.func @generator_kernel(%arg0: i32, %arg1: memref<8x64xf32, #tpu.memory_space<vmem>>, %arg2: memref<64x256xbf16, #tpu.memory_space<vmem>>, %arg3: memref<1x256xf32, #tpu.memory_space<vmem>>, %arg4: memref<256x896xbf16, #tpu.memory_space<vmem>>, %arg5: memref<1x896xf32, #tpu.memory_space<vmem>>, %arg6: memref<8x896xf32, #tpu.memory_space<vmem>>) attributes {dimension_semantics = [#tpu.dimension_semantics<parallel>], iteration_bounds = array<i64: 1>, scalar_prefetch = 0 : i64, scratch_operands = 0 : i64, tpu.core_type = #tpu.core_type<tc>, window_params = [{transform_indices = @transform_0, window_bounds = array<i64: 8, 64>}, {pipeline_mode = #tpu.pipeline_mode<synchronous>, transform_indices = @transform_1, window_bounds = array<i64: 64, 256>}, {pipeline_mode = #tpu.pipeline_mode<synchronous>, transform_indices = @transform_2, window_bounds = array<i64: 1, 256>}, {pipeline_mode = #tpu.pipeline_mode<synchronous>, transform_indices = @transform_3, window_bounds = array<i64: 256, 896>}, {pipeline_mode = #tpu.pipeline_mode<synchronous>, transform_indices = @transform_4, window_bounds = array<i64: 1, 896>}, {transform_indices = @transform_5, window_bounds = array<i64: 8, 896>}]} {
    %c0 = arith.constant 0 : index
    %c0_0 = arith.constant 0 : index
    %0 = vector.load %arg1[%c0, %c0_0] : memref<8x64xf32, #tpu.memory_space<vmem>>, vector<8x64xf32>
    %1 = arith.truncf %0 : vector<8x64xf32> to vector<8x64xbf16>
    %c0_1 = arith.constant 0 : index
    %c0_2 = arith.constant 0 : index
    %2 = vector.load %arg2[%c0_1, %c0_2] : memref<64x256xbf16, #tpu.memory_space<vmem>>, vector<64x256xbf16>
    %cst = arith.constant dense<0.000000e+00> : vector<8x256xf32>
    %3 = tpu.matmul %1, %2, %cst {dimension_numbers = #tpu.dot_dimension_numbers<[1], [0], [0], [1], [0, 0, 1, 1], [], []>} : vector<8x64xbf16>, vector<64x256xbf16>, vector<8x256xf32> -> vector<8x256xf32>
    %c0_3 = arith.constant 0 : index
    %c0_4 = arith.constant 0 : index
    %4 = vector.load %arg3[%c0_3, %c0_4] : memref<1x256xf32, #tpu.memory_space<vmem>>, vector<1x256xf32>
    %5 = vector.broadcast %4 : vector<1x256xf32> to vector<8x256xf32>
    %6 = arith.addf %3, %5 : vector<8x256xf32>
    %cst_5 = arith.constant 0.000000e+00 : f32
    %7 = vector.broadcast %cst_5 : f32 to vector<8x256xf32>
    %8 = arith.cmpf ogt, %6, %7 : vector<8x256xf32>
    %cst_6 = arith.constant 0.00999999977 : f32
    %9 = vector.broadcast %cst_6 : f32 to vector<8x256xf32>
    %10 = arith.mulf %9, %6 : vector<8x256xf32>
    %11 = arith.select %8, %6, %10 : vector<8x256xi1>, vector<8x256xf32>
    %12 = arith.truncf %11 : vector<8x256xf32> to vector<8x256xbf16>
    %c0_7 = arith.constant 0 : index
    %c0_8 = arith.constant 0 : index
    %13 = vector.load %arg4[%c0_7, %c0_8] : memref<256x896xbf16, #tpu.memory_space<vmem>>, vector<256x896xbf16>
    %cst_9 = arith.constant dense<0.000000e+00> : vector<8x896xf32>
    %14 = tpu.matmul %12, %13, %cst_9 {dimension_numbers = #tpu.dot_dimension_numbers<[1], [0], [0], [1], [0, 0, 1, 1], [], []>} : vector<8x256xbf16>, vector<256x896xbf16>, vector<8x896xf32> -> vector<8x896xf32>
    %c0_10 = arith.constant 0 : index
    %c0_11 = arith.constant 0 : index
    %15 = vector.load %arg5[%c0_10, %c0_11] : memref<1x896xf32, #tpu.memory_space<vmem>>, vector<1x896xf32>
    %16 = vector.broadcast %15 : vector<1x896xf32> to vector<8x896xf32>
    %17 = arith.addf %14, %16 : vector<8x896xf32>
    %18 = math.tanh %17 : vector<8x896xf32>
    %c0_12 = arith.constant 0 : index
    %c0_13 = arith.constant 0 : index
    %19 = vector.load %arg6[%c0_12, %c0_13] : memref<8x896xf32, #tpu.memory_space<vmem>>, vector<8x896xf32>
    tpu.vector_store %arg6[%c0_12, %c0_13], %18 {strides = array<i32>} : memref<8x896xf32, #tpu.memory_space<vmem>>, vector<8x896xf32>,
    return
  }
  func.func @transform_0(%arg0: i32) -> (i32, i32) {
    %c0_i32 = arith.constant 0 : i32
    %c0_i32_0 = arith.constant 0 : i32
    return %arg0, %c0_i32 : i32, i32
  }
  func.func @transform_1(%arg0: i32) -> (i32, i32) {
    %c0_i32 = arith.constant 0 : i32
    %c0_i32_0 = arith.constant 0 : i32
    %c0_i32_1 = arith.constant 0 : i32
    return %c0_i32, %c0_i32_0 : i32, i32
  }
  func.func @transform_2(%arg0: i32) -> (i32, i32) {
    %c0_i32 = arith.constant 0 : i32
    %c0_i32_0 = arith.constant 0 : i32
    %c0_i32_1 = arith.constant 0 : i32
    return %c0_i32, %c0_i32_0 : i32, i32
  }
  func.func @transform_3(%arg0: i32) -> (i32, i32) {
    %c0_i32 = arith.constant 0 : i32
    %c0_i32_0 = arith.constant 0 : i32
    %c0_i32_1 = arith.constant 0 : i32
    return %c0_i32, %c0_i32_0 : i32, i32
  }
  func.func @transform_4(%arg0: i32) -> (i32, i32) {
    %c0_i32 = arith.constant 0 : i32
    %c0_i32_0 = arith.constant 0 : i32
    %c0_i32_1 = arith.constant 0 : i32
    return %c0_i32, %c0_i32_0 : i32, i32
  }
  func.func @transform_5(%arg0: i32) -> (i32, i32) {
    %c0_i32 = arith.constant 0 : i32
    %c0_i32_0 = arith.constant 0 : i32
    return %arg0, %c0_i32 : i32, i32
  }
}

</mosaic_0001>

<bundles_post_ra>
// kernel: generator_forward.1
= control target key start
LH: loop header
LB: loop body
LE: loop exit
PB: predicated region body
PF: predicated region fallthrough
CT: control target
= control target key end

     0   :  { %10 = vsyncpa [#allocation3], 0  ;;  %s1750_s0 = inlined_call_operand.hbm [shape: f32[8,64], index: 0, kind: input, shape index: {}]   ;;  %s1751_s1 = inlined_call_operand.hbm [shape: bf16[64,256], index: 1, kind: input, shape index: {}]   ;;  %s1752_s2 = inlined_call_operand.hbm [shape: f32[1,256], index: 2, kind: input, shape index: {}]   ;;  %s1753_s3 = inlined_call_operand.hbm [shape: bf16[256,896], index: 3, kind: input, shape index: {}]   ;;  %s1754_s4 = inlined_call_operand.hbm [shape: f32[1,896], index: 4, kind: input, shape index: {}]   ;;  %s1755_s5 = inlined_call_operand.hbm [shape: f32[8,896], index: 5, kind: output, shape index: {}]  }
   0x1   :  { %11 = vsyncpa [#allocation6], 0 }
   0x2   :  { %12 = vsyncpa [#allocation9], 0 }
   0x3   :  { %13 = vsyncpa [#allocation4], 0  ;;  %s1614_s18 = smov [#allocation5]   ;;  %s1474_s22 = scalar_lea.hbm %s1751_s1, 1024 }
   0x4   :  { %s29_s19 = sshll.u32 %s1614_s18, 4  ;;  %p1475_p0 = scmp.ne.s32.totalorder %s1751_s1, %s1474_s22  ;;  %s30_s19 = int_to_ptr.vmem [resolvable:$true] %s29_s19 }
   0x5   :  { %p1478_p1 = scmp.lt.u32.totalorder %s1474_s22, %s1751_s1 }
   0x7   :  { %p1480_p2 = pnand %p1478_p1, %p1475_p0 }
   0x9   :  { %1483 = shalt.err (!%p1480_p2)
}
   0xa   :  { %s1484_s27 = scalar_lea.vmem %s30_s19, 1024  ;;  %p1489_p4 = scmp.lt.s32.totalorder %s30_s19, %s30_s19 }
   0xb   :  { %p1485_p3 = scmp.ne.s32.totalorder %s30_s19, %s1484_s27  ;;  %p1490_p5 = scmp.lt.s32.totalorder %s1484_s27, %s1484_s27 }
   0xd   :  { %p1491_p6 = por %p1490_p5, %p1489_p4 }
   0xf   :  { %p1492_p7 = pnand %p1491_p6, %p1485_p3 }
  0x11   :  { %1495 = shalt.err (!%p1492_p7)
}
  0x12   :  { %s1615_s28 = smov 128   ;;  %s1616_s29 = smov 8  }
  0x13   :  { %35 = dma.hbm_to_vmem [thread:$0]  %s1751_s1, 1024, %s30_s19, [#allocation6], %s1615_s28, %s1615_s28, %s1616_s29  }
  0x14   :  { %s1617_s7 = smov [#allocation8]   ;;  %s1496_s11 = scalar_lea.hbm %s1753_s3, 14336 }
  0x15   :  { %s51_s8 = sshll.u32 %s1617_s7, 4  ;;  %p1497_p8 = scmp.ne.s32.totalorder %s1753_s3, %s1496_s11  ;;  %s52_s8 = int_to_ptr.vmem [resolvable:$true] %s51_s8 }
  0x16   :  { %p1500_p9 = scmp.lt.u32.totalorder %s1496_s11, %s1753_s3 }
  0x18   :  { %p1502_p10 = pnand %p1500_p9, %p1497_p8 }
  0x1a   :  { %1505 = shalt.err (!%p1502_p10)
}
  0x1b   :  { %s1506_s16 = scalar_lea.vmem %s52_s8, 14336  ;;  %p1511_p12 = scmp.lt.s32.totalorder %s52_s8, %s52_s8 }
  0x1c   :  { %p1507_p11 = scmp.ne.s32.totalorder %s52_s8, %s1506_s16  ;;  %p1512_p13 = scmp.lt.s32.totalorder %s1506_s16, %s1506_s16 }
  0x1e   :  { %p1513_p0 = por %p1512_p13, %p1511_p12 }
  0x20   :  { %p1514_p1 = pnand %p1513_p0, %p1507_p11 }
  0x22   :  { %1517 = shalt.err (!%p1514_p1)
}
  0x23   :  { %s1618_s1 = smov 448   ;;  %s1619_s17 = smov 28  }
  0x24   :  { %57 = dma.hbm_to_vmem [thread:$0]  %s1753_s3, 14336, %s52_s8, [#allocation9], %s1618_s1, %s1618_s1, %s1619_s17  }
  0x25   :  { %s1620_s20 = smov [#allocation2]   ;;  %s1621_s22 = smov [#allocation7]  }
  0x26   :  { %s20_s21 = sshll.u32 %s1620_s20, 4  ;;  %s42_s23 = sshll.u32 %s1621_s22, 4  ;;  %s21_s21 = int_to_ptr.vmem [resolvable:$true] %s20_s21  ;;  %s43_s23 = int_to_ptr.vmem [resolvable:$true] %s42_s23 }
  0x27   :  { %s1518_s26 = scalar_lea.hbm %s1750_s0, 128 }
  0x28   :  { %p1519_p2 = scmp.ne.s32.totalorder %s1750_s0, %s1518_s26  ;;  %p1522_p3 = scmp.lt.u32.totalorder %s1518_s26, %s1750_s0 }
  0x2a   :  { %p1524_p4 = pnand %p1522_p3, %p1519_p2 }
  0x2c   :  { %1527 = shalt.err (!%p1524_p4)
}
  0x2d   :  { %s1528_s3 = scalar_lea.vmem %s21_s21, 128  ;;  %p1533_p6 = scmp.lt.s32.totalorder %s21_s21, %s21_s21 }
  0x2e   :  { %p1529_p5 = scmp.ne.s32.totalorder %s21_s21, %s1528_s3  ;;  %p1534_p7 = scmp.lt.s32.totalorder %s1528_s3, %s1528_s3 }
  0x30   :  { %p1535_p8 = por %p1534_p7, %p1533_p6 }
  0x32   :  { %p1536_p9 = pnand %p1535_p8, %p1529_p5 }
  0x34   :  { %1539 = shalt.err (!%p1536_p9)
}
  0x35   :  { %23 = dma.hbm_to_vmem [thread:$0]  %s1750_s0, 128, %s21_s21, [#allocation3]  }
  0x36   :  { %s1540_s10 = scalar_lea.hbm %s1752_s2, 32 }
  0x37   :  { %p1541_p10 = scmp.ne.s32.totalorder %s1752_s2, %s1540_s10  ;;  %p1544_p11 = scmp.lt.u32.totalorder %s1540_s10, %s1752_s2 }
  0x39   :  { %p1546_p12 = pnand %p1544_p11, %p1541_p10 }
  0x3b   :  { %1549 = shalt.err (!%p1546_p12)
}
  0x3c   :  { %s1550_s15 = scalar_lea.vmem %s43_s23, 32  ;;  %p1555_p0 = scmp.lt.s32.totalorder %s43_s23, %s43_s23 }
  0x3d   :  { %p1551_p13 = scmp.ne.s32.totalorder %s43_s23, %s1550_s15  ;;  %p1556_p1 = scmp.lt.s32.totalorder %s1550_s15, %s1550_s15 }
  0x3f   :  { %p1557_p2 = por %p1556_p1, %p1555_p0 }
  0x41   :  { %p1558_p3 = pnand %p1557_p2, %p1551_p13 }
  0x43   :  { %1561 = shalt.err (!%p1558_p3)
}
  0x44   :  { %45 = dma.hbm_to_vmem [thread:$0]  %s1752_s2, 32, %s43_s23, [#allocation6]  }
  0x45   :  { %s1622_s1 = smov [#allocation10]   ;;  %s1562_s20 = scalar_lea.hbm %s1754_s4, 112 }
  0x46   :  { %s64_s17 = sshll.u32 %s1622_s1, 4  ;;  %p1563_p4 = scmp.ne.s32.totalorder %s1754_s4, %s1562_s20  ;;  %s65_s17 = int_to_ptr.vmem [resolvable:$true] %s64_s17 }
  0x47   :  { %p1566_p5 = scmp.lt.u32.totalorder %s1562_s20, %s1754_s4 }
  0x49   :  { %p1568_p6 = pnand %p1566_p5, %p1563_p4 }
  0x4b   :  { %1571 = shalt.err (!%p1568_p6)
}
  0x4c   :  { %s1572_s26 = scalar_lea.vmem %s65_s17, 112  ;;  %s1576_s2 = scalar_lea.vmem %s65_s17, 128 }
  0x4d   :  { %p1573_p7 = scmp.ne.s32.totalorder %s65_s17, %s1572_s26  ;;  %p1577_p8 = scmp.lt.s32.totalorder %s65_s17, %s65_s17 }
  0x4e   :  { %p1578_p9 = scmp.lt.s32.totalorder %s1576_s2, %s1572_s26 }
  0x50   :  { %p1579_p10 = por %p1578_p9, %p1577_p8 }
  0x52   :  { %p1580_p11 = pnand %p1579_p10, %p1573_p7 }
  0x54   :  { %1583 = shalt.err (!%p1580_p11)
}
  0x55   :  { %67 = dma.hbm_to_vmem [thread:$0]  %s1754_s4, 112, %s65_s17, [#allocation9]  }
  0x56   :  { %1606 = dma.done.wait [#allocation3], 128  }
  0x57   :  { %1607 = vsyncadd [#allocation3], 4294967168 }
  0x58   :  { %1608 = dma.done.wait [#allocation6], 1056  }
  0x59   :  { %1609 = vsyncadd [#allocation6], 4294966240 }
  0x5a   :  { %1610 = dma.done.wait [#allocation9], 14448  }
  0x5b   :  { %1611 = vsyncadd [#allocation9], 4294952848  ;;  %v1623_v0 = vmov 0   ;;  %v1288_v1 = vld [vmem:[#allocation5 + $0x4] ss:$8 sps:$4 sm:$0xff]   ;;  %v84_v12 = vld [vmem:[#allocation2] sm:$0xff] }
  0x5c   :  { %182 = vmatprep.mubr.bf16.mxu0 %v1623_v0  ;;  %v1290_v2 = vld [vmem:[#allocation5] ss:$8 sps:$4 sm:$0xff]   ;;  %150 = vmatprep.subr.bf16.mxu0 %v1288_v1  ;;  %v1291_v3 = vld [vmem:[#allocation5 + $0x14] ss:$8 sps:$4 sm:$0xff]   ;;  %v1293_v4 = vld [vmem:[#allocation5 + $0x10] ss:$8 sps:$4 sm:$0xff]   ;;  %v85_v16 = vpack.c.bf16 %v84_v12, %v84_v12 }
  0x5d   :  { %151 = vmatpush1.bf16.msra.mxu0 %v1290_v2  ;;  %v1294_v5 = vld [vmem:[#allocation5 + $0x24] ss:$8 sps:$4 sm:$0xff]   ;;  %v1296_v7 = vld [vmem:[#allocation5 + $0x20] ss:$8 sps:$4 sm:$0xff]   ;;  %v1297_v8 = vld [vmem:[#allocation5 + $0x34] ss:$8 sps:$4 sm:$0xff]  }
  0x5e   :  { %152 = vmatprep.subr.bf16.mxu0 %v1291_v3  ;;  %v1300_v6 = vld [vmem:[#allocation8 + $0x4] ss:$28 sps:$4 sm:$0xff]   ;;  %v1306_v10 = vld [vmem:[#allocation8 + $0x3c] ss:$28 sps:$4 sm:$0xff]   ;;  %v1312_v14 = vld [vmem:[#allocation8 + $0x74] ss:$28 sps:$4 sm:$0xff]  }
  0x5f   :  { %940 = vmatprep.subr.bf16.mxu1 %v1300_v6  ;;  %v1305_v9 = vld [vmem:[#allocation8] ss:$28 sps:$4 sm:$0xff]   ;;  %v1299_v11 = vld [vmem:[#allocation5 + $0x30] ss:$8 sps:$4 sm:$0xff]   ;;  %vm146_vm0 = vcmask 523264   ;;  %s1624_s4 = smov [#allocation11]  }
  0x60   :  { %941 = vmatpush1.bf16.msra.mxu1 %v1305_v9  ;;  %v1311_v13 = vld [vmem:[#allocation8 + $0x38] ss:$28 sps:$4 sm:$0xff]   ;;  %v1304_v15 = vld [vmem:[#allocation8 + $0xc] ss:$28 sps:$4 sm:$0xff]   ;;  %v1310_v20 = vld [vmem:[#allocation8 + $0x44] ss:$28 sps:$4 sm:$0xff]  }
  0x61   :  { %153 = vmatpush1.bf16.msra.mxu0 %v1293_v4  ;;  %942 = vmatprep.subr.bf16.mxu1 %v1306_v10  ;;  %v1317_v17 = vld [vmem:[#allocation8 + $0x70] ss:$28 sps:$4 sm:$0xff]   ;;  %v1302_v18 = vld [vmem:[#allocation8 + $0x8] ss:$28 sps:$4 sm:$0xff]   ;;  %v1308_v21 = vld [vmem:[#allocation8 + $0x40] ss:$28 sps:$4 sm:$0xff]  }
  0x62   :  { %154 = vmatprep.subr.bf16.mxu0 %v1294_v5  ;;  %v1318_v19 = vld [vmem:[#allocation8 + $0xac] ss:$28 sps:$4 sm:$0xff]   ;;  %v1324_v23 = vld [vmem:[#allocation8 + $0xe4] ss:$28 sps:$4 sm:$0xff]   ;;  %v1316_v24 = vld [vmem:[#allocation8 + $0x7c] ss:$28 sps:$4 sm:$0xff]  }
  0x63   :  { %v1323_v22 = vld [vmem:[#allocation8 + $0xa8] ss:$28 sps:$4 sm:$0xff]   ;;  %v1329_v25 = vld [vmem:[#allocation8 + $0xe0] ss:$28 sps:$4 sm:$0xff]   ;;  %v1314_v26 = vld [vmem:[#allocation8 + $0x78] ss:$28 sps:$4 sm:$0xff]  }
  0x64   :  { %943 = vmatpush1.bf16.msra.mxu1 %v1311_v13  ;;  %v1330_v27 = vld [vmem:[#allocation8 + $0x11c] ss:$28 sps:$4 sm:$0xff]   ;;  %v1322_v28 = vld [vmem:[#allocation8 + $0xb4] ss:$28 sps:$4 sm:$0xff]   ;;  %v1328_v32 = vld [vmem:[#allocation8 + $0xec] ss:$28 sps:$4 sm:$0xff]   ;;  %v96_v13 = vlaneseq }
  0x65   :  { %155 = vmatpush1.bf16.msra.mxu0 %v1296_v7  ;;  %944 = vmatprep.subr.bf16.mxu1 %v1312_v14  ;;  %v1320_v29 = vld [vmem:[#allocation8 + $0xb0] ss:$28 sps:$4 sm:$0xff]   ;;  %v1335_v30 = vld [vmem:[#allocation8 + $0x118] ss:$28 sps:$4 sm:$0xff]   ;;  %v1326_v34 = vld [vmem:[#allocation8 + $0xe8] ss:$28 sps:$4 sm:$0xff]  }
  0x66   :  { %156 = vmatprep.subr.bf16.mxu0 %v1297_v8  ;;  %v1336_v31 = vld [vmem:[#allocation8 + $0x154] ss:$28 sps:$4 sm:$0xff]   ;;  %v1342_v35 = vld [vmem:[#allocation8 + $0x18c] ss:$28 sps:$4 sm:$0xff]   ;;  %v1334_v36 = vld [vmem:[#allocation8 + $0x124] ss:$28 sps:$4 sm:$0xff]  }
  0x67   :  { %v1341_v33 = vld [vmem:[#allocation8 + $0x150] ss:$28 sps:$4 sm:$0xff]   ;;  %v1332_v37 = vld [vmem:[#allocation8 + $0x120] ss:$28 sps:$4 sm:$0xff]   ;;  %v1347_v38 = vld [vmem:[#allocation8 + $0x188] ss:$28 sps:$4 sm:$0xff]  }
  0x68   :  { %945 = vmatpush1.bf16.msra.mxu1 %v1317_v17  ;;  %v1348_v39 = vld [vmem:[#allocation8 + $0x1c4] ss:$28 sps:$4 sm:$0xff]   ;;  %v1340_v40 = vld [vmem:[#allocation8 + $0x15c] ss:$28 sps:$4 sm:$0xff]   ;;  %v1346_v44 = vld [vmem:[#allocation8 + $0x194] ss:$28 sps:$4 sm:$0xff]  }
  0x69   :  { %157 = vmatpush1.bf16.msra.mxu0 %v1299_v11  ;;  %946 = vmatprep.subr.bf16.mxu1 %v1318_v19  ;;  %v1353_v41 = vld [vmem:[#allocation8 + $0x1c0] ss:$28 sps:$4 sm:$0xff]   ;;  %v1338_v42 = vld [vmem:[#allocation8 + $0x158] ss:$28 sps:$4 sm:$0xff]   ;;  %v1344_v45 = vld [vmem:[#allocation8 + $0x190] ss:$28 sps:$4 sm:$0xff]  }
  0x6a   :  { %981 = vmatprep.subr.bf16.mxu0 %v1304_v15  ;;  %v1354_v43 = vld [vmem:[#allocation8 + $0x1fc] ss:$28 sps:$4 sm:$0xff]   ;;  %v1352_v46 = vld [vmem:[#allocation8 + $0x1cc] ss:$28 sps:$4 sm:$0xff]   ;;  %v1360_v48 = vld [vmem:[#allocation8 + $0x234] ss:$28 sps:$4 sm:$0xff]  }
  0x6b   :  { %v1359_v47 = vld [vmem:[#allocation8 + $0x1f8] ss:$28 sps:$4 sm:$0xff]   ;;  %v1365_v49 = vld [vmem:[#allocation8 + $0x230] ss:$28 sps:$4 sm:$0xff]   ;;  %v1350_v50 = vld [vmem:[#allocation8 + $0x1c8] ss:$28 sps:$4 sm:$0xff]  }
  0x6c   :  { %1142 = vmatmul.mubr.msk.bf16.vlgmr.msra.gmra.mrb[0].mxu0 %vm146_vm0, %v85_v16  ;;  %947 = vmatpush1.bf16.msra.mxu1 %v1323_v22  ;;  %v1366_v51 = vld [vmem:[#allocation8 + $0x26c] ss:$28 sps:$4 sm:$0xff]   ;;  %v1358_v52 = vld [vmem:[#allocation8 + $0x204] ss:$28 sps:$4 sm:$0xff]   ;;  %v1364_v56 = vld [vmem:[#allocation8 + $0x23c] ss:$28 sps:$4 sm:$0xff]  }
  0x6d   :  { %982 = vmatpush1.bf16.msra.mxu0 %v1302_v18  ;;  %948 = vmatprep.subr.bf16.mxu1 %v1324_v23  ;;  %v1371_v53 = vld [vmem:[#allocation8 + $0x268] ss:$28 sps:$4 sm:$0xff]   ;;  %v1356_v54 = vld [vmem:[#allocation8 + $0x200] ss:$28 sps:$4 sm:$0xff]   ;;  %v1362_v58 = vld [vmem:[#allocation8 + $0x238] ss:$28 sps:$4 sm:$0xff]  }
  0x6e   :  { %983 = vmatprep.subr.bf16.mxu0 %v1310_v20  ;;  %v1372_v55 = vld [vmem:[#allocation8 + $0x2a4] ss:$28 sps:$4 sm:$0xff]   ;;  %v1378_v59 = vld [vmem:[#allocation8 + $0x2dc] ss:$28 sps:$4 sm:$0xff]   ;;  %v1370_v60 = vld [vmem:[#allocation8 + $0x274] ss:$28 sps:$4 sm:$0xff]  }
  0x6f   :  { %v1377_v57 = vld [vmem:[#allocation8 + $0x2a0] ss:$28 sps:$4 sm:$0xff]   ;;  %v1383_v61 = vld [vmem:[#allocation8 + $0x2d8] ss:$28 sps:$4 sm:$0xff]   ;;  %v1368_v62 = vld [vmem:[#allocation8 + $0x270] ss:$28 sps:$4 sm:$0xff]  }
  0x70   :  { %949 = vmatpush1.bf16.msra.mxu1 %v1329_v25  ;;  %v1376_v63 = vld [vmem:[#allocation8 + $0x2ac] ss:$28 sps:$4 sm:$0xff]   ;;  %v1382_v1 = vld [vmem:[#allocation8 + $0x2e4] ss:$28 sps:$4 sm:$0xff]   ;;  %v1384_v3 = vld [vmem:[#allocation8 + $0x314] ss:$28 sps:$4 sm:$0xff]  }
  0x71   :  { %984 = vmatpush1.bf16.msra.mxu0 %v1308_v21  ;;  %950 = vmatprep.subr.bf16.mxu1 %v1330_v27  ;;  %v1374_v0 = vld [vmem:[#allocation8 + $0x2a8] ss:$28 sps:$4 sm:$0xff]   ;;  %v1380_v2 = vld [vmem:[#allocation8 + $0x2e0] ss:$28 sps:$4 sm:$0xff]   ;;  %v1386_v5 = vld [vmem:[#allocation8 + $0x318] ss:$28 sps:$4 sm:$0xff]  }
  0x72   :  { %985 = vmatprep.subr.bf16.mxu0 %v1316_v24  ;;  %v1388_v4 = vld [vmem:[#allocation8 + $0x31c] ss:$28 sps:$4 sm:$0xff]   ;;  %v1389_v6 = vld [vmem:[#allocation8 + $0x310] ss:$28 sps:$4 sm:$0xff]   ;;  %v1395_v10 = vld [vmem:[#allocation8 + $0x348] ss:$28 sps:$4 sm:$0xff]  }
  0x73   :  { %v1390_v7 = vld [vmem:[#allocation8 + $0x34c] ss:$28 sps:$4 sm:$0xff]   ;;  %v1394_v8 = vld [vmem:[#allocation8 + $0x354] ss:$28 sps:$4 sm:$0xff]   ;;  %v1715_v14 = vshrl.u32 %v96_v13, 7  ;;  %s1123_s28 = sshll.u32 %s1624_s4, 4  ;;  %s1124_s28 = int_to_ptr.vmem [resolvable:$true] %s1123_s28 }
  0x74   :  { %951 = vmatpush1.bf16.msra.mxu1 %v1335_v30  ;;  %v1392_v9 = vld [vmem:[#allocation8 + $0x350] ss:$28 sps:$4 sm:$0xff]   ;;  %v1399_v12 = vld [vmem:[#allocation8 + $0x1d8] ss:$28 sps:$4 sm:$0xff]   ;;  %v94_v16 = vld [vmem:[#allocation7] sm:$0x3]  ;;  %p1589_p13 = scmp.lt.s32.totalorder %s1124_s28, %s1124_s28 }
  0x75   :  { %986 = vmatpush1.bf16.msra.mxu0 %v1314_v26  ;;  %952 = vmatprep.subr.bf16.mxu1 %v1336_v31  ;;  %v1398_v11 = vld [vmem:[#allocation8 + $0x14] ss:$28 sps:$4 sm:$0xff]   ;;  %v98_v15 = vsub.s32 0, %v1715_v14  ;;  %v102_v17 = vsub.s32 1, %v1715_v14  ;;  %s1584_s29 = scalar_lea.vmem %s1124_s28, 896 }
  0x76   :  { %987 = vmatprep.subr.bf16.mxu0 %v1322_v28  ;;  %v1396_v31 = vld [vmem:[#allocation8 + $0x10] ss:$28 sps:$4 sm:$0xff]   ;;  %v1457_v13 = vld [vmem:[#allocation8 + $0x358] ss:$28 sps:$4 sm:$0xff]   ;;  %p1585_p12 = scmp.ne.s32.totalorder %s1124_s28, %s1584_s29  ;;  %p1590_p0 = scmp.lt.s32.totalorder %s1584_s29, %s1584_s29 }
  0x77   :  { %v99_v18 = vrot.slane %v94_v16, %v98_v15  ;;  %v103_v19 = vrot.slane %v94_v16, %v102_v17  ;;  %v339_v16 = vsub.s32 2, %v1715_v14 }
  0x78   :  { %953 = vmatpush1.bf16.msra.mxu1 %v1341_v33  ;;  %p1591_p1 = por %p1590_p0, %p1589_p13 }
  0x79   :  { %988 = vmatpush1.bf16.msra.mxu0 %v1320_v29  ;;  %954 = vmatprep.subr.bf16.mxu1 %v1342_v35  ;;  %v1404_v35 = vld [vmem:[#allocation8 + $0x210] ss:$28 sps:$4 sm:$0xff]  }
  0x7a   :  { %989 = vmatprep.subr.bf16.mxu0 %v1328_v32  ;;  %v1400_v32 = vld [vmem:[#allocation8 + $0x18] ss:$28 sps:$4 sm:$0xff]   ;;  %p1592_p2 = pnand %p1591_p1, %p1585_p12 }
  0x7c   :  { %955 = vmatpush1.bf16.msra.mxu1 %v1347_v38  ;;  %v1408_v38 = vld [vmem:[#allocation8 + $0x84] ss:$28 sps:$4 sm:$0xff]  }
  0x7d   :  { %990 = vmatpush1.bf16.msra.mxu0 %v1326_v34  ;;  %956 = vmatprep.subr.bf16.mxu1 %v1348_v39  ;;  %v1403_v34 = vld [vmem:[#allocation8 + $0x4c] ss:$28 sps:$4 sm:$0xff]  }
  0x7e   :  { %991 = vmatprep.subr.bf16.mxu0 %v1334_v36  ;;  %v1401_v36 = vld [vmem:[#allocation8 + $0x48] ss:$28 sps:$4 sm:$0xff]  }
  0x7f   :  { %v1409_v39 = vld [vmem:[#allocation8 + $0x248] ss:$28 sps:$4 sm:$0xff]  }
  0x80   :  { %957 = vmatpush1.bf16.msra.mxu1 %v1353_v41  ;;  %v1410_v41 = vld [vmem:[#allocation8 + $0x88] ss:$28 sps:$4 sm:$0xff]  }
  0x81   :  { %992 = vmatpush1.bf16.msra.mxu0 %v1332_v37  ;;  %958 = vmatprep.subr.bf16.mxu1 %v1354_v43  ;;  %v1405_v37 = vld [vmem:[#allocation8 + $0x50] ss:$28 sps:$4 sm:$0xff]   ;;  %v1414_v43 = vld [vmem:[#allocation8 + $0x280] ss:$28 sps:$4 sm:$0xff]  }
  0x82   :  { %993 = vmatprep.subr.bf16.mxu0 %v1340_v40  ;;  %v1406_v40 = vld [vmem:[#allocation8 + $0x80] ss:$28 sps:$4 sm:$0xff]  }
  0x84   :  { %959 = vmatpush1.bf16.msra.mxu1 %v1359_v47  ;;  %v1419_v47 = vld [vmem:[#allocation8 + $0x2b8] ss:$28 sps:$4 sm:$0xff]  }
  0x85   :  { %994 = vmatpush1.bf16.msra.mxu0 %v1338_v42  ;;  %960 = vmatprep.subr.bf16.mxu1 %v1360_v48  ;;  %v1413_v42 = vld [vmem:[#allocation8 + $0xbc] ss:$28 sps:$4 sm:$0xff]   ;;  %v1416_v48 = vld [vmem:[#allocation8 + $0xf0] ss:$28 sps:$4 sm:$0xff]  }
  0x86   :  { %995 = vmatprep.subr.bf16.mxu0 %v1346_v44  ;;  %v1411_v44 = vld [vmem:[#allocation8 + $0xb8] ss:$28 sps:$4 sm:$0xff]  }
  0x88   :  { %961 = vmatpush1.bf16.msra.mxu1 %v1365_v49  ;;  %v1420_v49 = vld [vmem:[#allocation8 + $0xf8] ss:$28 sps:$4 sm:$0xff]  }
  0x89   :  { %996 = vmatpush1.bf16.msra.mxu0 %v1344_v45  ;;  %962 = vmatprep.subr.bf16.mxu1 %v1366_v51  ;;  %v1415_v45 = vld [vmem:[#allocation8 + $0xc0] ss:$28 sps:$4 sm:$0xff]   ;;  %v1424_v51 = vld [vmem:[#allocation8 + $0x2f0] ss:$28 sps:$4 sm:$0xff]  }
  0x8a   :  { %997 = vmatprep.subr.bf16.mxu0 %v1352_v46  ;;  %v1418_v46 = vld [vmem:[#allocation8 + $0xf4] ss:$28 sps:$4 sm:$0xff]  }
  0x8c   :  { %963 = vmatpush1.bf16.msra.mxu1 %v1371_v53  ;;  %v1425_v53 = vld [vmem:[#allocation8 + $0x130] ss:$28 sps:$4 sm:$0xff]  }
  0x8d   :  { %998 = vmatpush1.bf16.msra.mxu0 %v1350_v50  ;;  %964 = vmatprep.subr.bf16.mxu1 %v1372_v55  ;;  %v1423_v50 = vld [vmem:[#allocation8 + $0x12c] ss:$28 sps:$4 sm:$0xff]  }
  0x8e   :  { %999 = vmatprep.subr.bf16.mxu0 %v1358_v52  ;;  %v1421_v52 = vld [vmem:[#allocation8 + $0x128] ss:$28 sps:$4 sm:$0xff]  }
  0x8f   :  { %v1429_v55 = vld [vmem:[#allocation8 + $0x328] ss:$28 sps:$4 sm:$0xff]  }
  0x90   :  { %965 = vmatpush1.bf16.msra.mxu1 %v1377_v57  ;;  %v1430_v57 = vld [vmem:[#allocation8 + $0x168] ss:$28 sps:$4 sm:$0xff]  }
  0x91   :  { %1000 = vmatpush1.bf16.msra.mxu0 %v1356_v54  ;;  %966 = vmatprep.subr.bf16.mxu1 %v1378_v59  ;;  %v1428_v54 = vld [vmem:[#allocation8 + $0x164] ss:$28 sps:$4 sm:$0xff]  }
  0x92   :  { %1001 = vmatprep.subr.bf16.mxu0 %v1364_v56  ;;  %v1426_v56 = vld [vmem:[#allocation8 + $0x160] ss:$28 sps:$4 sm:$0xff]  }
  0x93   :  { %v1434_v59 = vld [vmem:[#allocation8 + $0x360] ss:$28 sps:$4 sm:$0xff]  }
  0x94   :  { %967 = vmatpush1.bf16.msra.mxu1 %v1383_v61  ;;  %v1435_v61 = vld [vmem:[#allocation8 + $0x1a0] ss:$28 sps:$4 sm:$0xff]  }
  0x95   :  { %1002 = vmatpush1.bf16.msra.mxu0 %v1362_v58  ;;  %968 = vmatprep.subr.bf16.mxu1 %v1384_v3  ;;  %v1433_v58 = vld [vmem:[#allocation8 + $0x19c] ss:$28 sps:$4 sm:$0xff]  }
  0x96   :  { %1003 = vmatprep.subr.bf16.mxu0 %v1370_v60  ;;  %v1431_v60 = vld [vmem:[#allocation8 + $0x198] ss:$28 sps:$4 sm:$0xff]   ;;  %v1442_v3 = vld [vmem:[#allocation8 + $0x240] ss:$28 sps:$4 sm:$0xff]  }
  0x98   :  { %969 = vmatpush1.bf16.msra.mxu1 %v1389_v6  ;;  %v1450_v6 = vld [vmem:[#allocation8 + $0x2b4] ss:$28 sps:$4 sm:$0xff]  }
  0x99   :  { %1004 = vmatpush1.bf16.msra.mxu0 %v1368_v62  ;;  %970 = vmatprep.subr.bf16.mxu1 %v1390_v7  ;;  %v1438_v62 = vld [vmem:[#allocation8 + $0x1d4] ss:$28 sps:$4 sm:$0xff]  }
  0x9a   :  { %1005 = vmatprep.subr.bf16.mxu0 %v1376_v63  ;;  %v1436_v63 = vld [vmem:[#allocation8 + $0x1d0] ss:$28 sps:$4 sm:$0xff]  }
  0x9b   :  { %v1448_v7 = vld [vmem:[#allocation8 + $0x2b0] ss:$28 sps:$4 sm:$0xff]  }
  0x9c   :  { %971 = vmatpush1.bf16.msra.mxu1 %v1395_v10  ;;  %v1456_v10 = vld [vmem:[#allocation8 + $0x324] ss:$28 sps:$4 sm:$0xff]  }
  0x9d   :  { %1006 = vmatpush1.bf16.msra.mxu0 %v1374_v0  ;;  %1022 = vmatprep.subr.bf16.mxu1 %v1398_v11  ;;  %v1441_v0 = vld [vmem:[#allocation8 + $0x20c] ss:$28 sps:$4 sm:$0xff]   ;;  %v1454_v11 = vld [vmem:[#allocation8 + $0x320] ss:$28 sps:$4 sm:$0xff]  }
  0x9e   :  { %1007 = vmatprep.subr.bf16.mxu0 %v1382_v1  ;;  %v1439_v1 = vld [vmem:[#allocation8 + $0x208] ss:$28 sps:$4 sm:$0xff]  }
  0xa1   :  { %1008 = vmatpush1.bf16.msra.mxu0 %v1380_v2  ;;  %v1444_v2 = vld [vmem:[#allocation8 + $0x244] ss:$28 sps:$4 sm:$0xff]  }
  0xa2   :  { %1009 = vmatprep.subr.bf16.mxu0 %v1388_v4  ;;  %v1447_v4 = vld [vmem:[#allocation8 + $0x27c] ss:$28 sps:$4 sm:$0xff]  }
  0xa5   :  { %1010 = vmatpush1.bf16.msra.mxu0 %v1386_v5  ;;  %v1445_v5 = vld [vmem:[#allocation8 + $0x278] ss:$28 sps:$4 sm:$0xff]  }
  0xa6   :  { %1011 = vmatprep.subr.bf16.mxu0 %v1394_v8  ;;  %v1453_v8 = vld [vmem:[#allocation8 + $0x2ec] ss:$28 sps:$4 sm:$0xff]  }
  0xa9   :  { %1012 = vmatpush1.bf16.msra.mxu0 %v1392_v9  ;;  %v1451_v9 = vld [vmem:[#allocation8 + $0x2e8] ss:$28 sps:$4 sm:$0xff]  }
  0xaa   :  { %1255 = vmatprep.subr.bf16.mxu0 %v1399_v12  ;;  %v1459_v12 = vld [vmem:[#allocation8 + $0x35c] ss:$28 sps:$4 sm:$0xff]  }
 0x13f   :  { %v184_v20 = vpop.f32.mrb[0].mxu0 }
 0x140   :  { %v185_v21 = vadd.f32 %v184_v20, %v99_v18  ;;  %v186_v22 = vpop.f32.mrb[1].mxu0  ;;  %v327_v18 = vld [vmem:[#allocation10] sm:$0xff] }
 0x141   :  { %v187_v23 = vadd.f32 %v186_v22, %v103_v19  ;;  %v188_v24 = vpop.f32.mrb[2].mxu0  ;;  %v343_v19 = vsub.s32 3, %v1715_v14  ;;  %v332_v20 = vrot.slane %v327_v18, %v98_v15  ;;  %v336_v22 = vrot.slane %v327_v18, %v102_v17 }
 0x142   :  { %vm191_vm1 = vcmp.gt.f32.partialorder %v185_v21, 0.0  ;;  %v193_v25 = vmul.f32 0.01, %v185_v21  ;;  %v189_v26 = vpop.f32.mrb[3].mxu0 }
 0x143   :  { %vm192_vm2 = vcmp.gt.f32.partialorder %v187_v23, 0.0  ;;  %v194_v27 = vmul.f32 0.01, %v187_v23 }
 0x144   :  { %v195_v28 = vsel %vm191_vm1, %v185_v21, %v193_v25  ;;  %v340_v21 = vrot.slane %v327_v18, %v339_v16 }
 0x145   :  { %v196_v29 = vsel %vm192_vm2, %v187_v23, %v194_v27  ;;  %v1723_v33 = vpack.c.bf16 %v195_v28, %v195_v28  ;;  %v344_v23 = vrot.slane %v327_v18, %v343_v19 }
 0x146   :  { %v198_v30 = vpack.c.bf16 %v196_v29, %v196_v29 }
 0x148   :  { %972 = vmatprep.mubr.bf16.mxu1 %v198_v30  ;;  %1013 = vmatprep.mubr.bf16.mxu0 %v198_v30 }
 0x149   :  { %973 = vmatmul.mubr.bf16.vlgmr.msra.gmra.mrb[0].mxu1 %v1723_v33  ;;  %1014 = vmatmul.mubr.bf16.vlgmr.msra.gmra.mrb[4].mxu0 %v1723_v33 }
 0x14a   :  { %1023 = vmatpush1.bf16.msra.mxu1 %v1396_v31  ;;  %1256 = vmatpush3.bf16.msra.mxu0 %v1400_v32 }
 0x14b   :  { %1054 = vmatprep.mubr.bf16.mxu1 %v198_v30  ;;  %1095 = vmatprep.mubr.bf16.mxu0 %v198_v30 }
 0x14c   :  { %1024 = vmatprep.subr.bf16.mxu1 %v1403_v34  ;;  %1257 = vmatprep.subr.bf16.mxu0 %v1404_v35 }
 0x14e   :  { %1025 = vmatpush1.bf16.msra.mxu1 %v1401_v36  ;;  %1258 = vmatpush3.bf16.msra.mxu0 %v1405_v37 }
 0x14f   :  { %1026 = vmatprep.subr.bf16.mxu1 %v1408_v38  ;;  %1259 = vmatprep.subr.bf16.mxu0 %v1409_v39  ;;  %v355_v38 = vsub.s32 6, %v1715_v14 }
 0x152   :  { %1027 = vmatpush1.bf16.msra.mxu1 %v1406_v40  ;;  %1260 = vmatpush3.bf16.msra.mxu0 %v1410_v41  ;;  %v356_v40 = vrot.slane %v327_v18, %v355_v38 }
 0x153   :  { %1028 = vmatprep.subr.bf16.mxu1 %v1413_v42  ;;  %1261 = vmatprep.subr.bf16.mxu0 %v1414_v43 }
 0x156   :  { %1029 = vmatpush1.bf16.msra.mxu1 %v1411_v44  ;;  %1262 = vmatpush3.bf16.msra.mxu0 %v1415_v45 }
 0x157   :  { %1030 = vmatprep.subr.bf16.mxu1 %v1418_v46  ;;  %1263 = vmatprep.subr.bf16.mxu0 %v1419_v47  ;;  %v347_v47 = vsub.s32 4, %v1715_v14 }
 0x15a   :  { %1031 = vmatpush1.bf16.msra.mxu1 %v1416_v48  ;;  %1264 = vmatpush3.bf16.msra.mxu0 %v1420_v49  ;;  %v351_v48 = vsub.s32 5, %v1715_v14  ;;  %v348_v49 = vrot.slane %v327_v18, %v347_v47 }
 0x15b   :  { %1032 = vmatprep.subr.bf16.mxu1 %v1423_v50  ;;  %1265 = vmatprep.subr.bf16.mxu0 %v1424_v51 }
 0x15c   :  { %v352_v50 = vrot.slane %v327_v18, %v351_v48 }
 0x15e   :  { %1033 = vmatpush1.bf16.msra.mxu1 %v1421_v52  ;;  %1266 = vmatpush3.bf16.msra.mxu0 %v1425_v53 }
 0x15f   :  { %1034 = vmatprep.subr.bf16.mxu1 %v1428_v54  ;;  %1267 = vmatprep.subr.bf16.mxu0 %v1429_v55 }
 0x162   :  { %1035 = vmatpush1.bf16.msra.mxu1 %v1426_v56  ;;  %1268 = vmatpush3.bf16.msra.mxu0 %v1430_v57 }
 0x163   :  { %1036 = vmatprep.subr.bf16.mxu1 %v1433_v58  ;;  %1269 = vmatprep.subr.bf16.mxu0 %v1434_v59 }
 0x166   :  { %1037 = vmatpush1.bf16.msra.mxu1 %v1431_v60  ;;  %1270 = vmatpush3.bf16.msra.mxu0 %v1435_v61 }
 0x167   :  { %1038 = vmatprep.subr.bf16.mxu1 %v1438_v62 }
 0x169   :  { %1096 = vmatmul.mubr.bf16.vlgmr.msra.gmra.mrb[8].mxu0 %v1723_v33 }
 0x16a   :  { %1039 = vmatpush1.bf16.msra.mxu1 %v1436_v63 }
 0x16b   :  { %1040 = vmatprep.subr.bf16.mxu1 %v1441_v0 }
 0x16e   :  { %1041 = vmatpush1.bf16.msra.mxu1 %v1439_v1 }
 0x16f   :  { %1042 = vmatprep.subr.bf16.mxu1 %v1444_v2 }
 0x172   :  { %1043 = vmatpush1.bf16.msra.mxu1 %v1442_v3 }
 0x173   :  { %1044 = vmatprep.subr.bf16.mxu1 %v1447_v4 }
 0x176   :  { %1045 = vmatpush1.bf16.msra.mxu1 %v1445_v5 }
 0x177   :  { %1046 = vmatprep.subr.bf16.mxu1 %v1450_v6 }
 0x17a   :  { %1047 = vmatpush1.bf16.msra.mxu1 %v1448_v7 }
 0x17b   :  { %1048 = vmatprep.subr.bf16.mxu1 %v1453_v8 }
 0x17e   :  { %1049 = vmatpush1.bf16.msra.mxu1 %v1451_v9 }
 0x17f   :  { %1050 = vmatprep.subr.bf16.mxu1 %v1456_v10 }
 0x182   :  { %1051 = vmatpush1.bf16.msra.mxu1 %v1454_v11 }
 0x183   :  { %1052 = vmatprep.subr.bf16.mxu1 %v1459_v12 }
 0x186   :  { %1053 = vmatpush1.bf16.msra.mxu1 %v1457_v13 }
 0x189   :  { %1055 = vmatmul.mubr.bf16.vlgmr.msra.gmra.mrb[4].mxu1 %v1723_v33 }
 0x21c   :  { %v974_v24 = vpop.f32.mrb[0].mxu1  ;;  %v1015_v25 = vpop.f32.mrb[4].mxu0 }
 0x21d   :  { %v975_v26 = vadd.f32 %v974_v24, %v332_v20  ;;  %v1016_v27 = vadd.f32 %v1015_v25, %v340_v21  ;;  %v976_v28 = vpop.f32.mrb[1].mxu1  ;;  %v1017_v29 = vpop.f32.mrb[5].mxu0 }
 0x21e   :  { %v977_v30 = vadd.f32 %v976_v28, %v336_v22  ;;  %v1018_v31 = vadd.f32 %v1017_v29, %v344_v23  ;;  %v978_v32 = vpop.f32.mrb[2].mxu1  ;;  %v1019_v33 = vpop.f32.mrb[6].mxu0 }
 0x21f   :  { %1460 = vtanh.f32 %v975_v26  ;;  %v979_v34 = vpop.f32.mrb[3].mxu1  ;;  %v1020_v35 = vpop.f32.mrb[7].mxu0 }
 0x220   :  { %1462 = vtanh.f32 %v1016_v27 }
 0x221   :  { %1464 = vtanh.f32 %v977_v30 }
 0x222   :  { %1466 = vtanh.f32 %v1018_v31 }
 0x229   :  { %v1461_v15 = vpop.eup %1460 }
 0x22a   :  { %v1463_v36 = vpop.eup %1462  ;;  %1110 = vst [vmem:[#allocation11] sm:$0xff] %v1461_v15 }
 0x22b   :  { %v1465_v17 = vpop.eup %1464  ;;  %1112 = vst [vmem:[#allocation11 + $0x10] sm:$0xff] %v1463_v36 }
 0x22c   :  { %v1467_v37 = vpop.eup %1466  ;;  %1111 = vst [vmem:[#allocation11 + $0x8] sm:$0xff] %v1465_v17 }
 0x22d   :  { %1113 = vst [vmem:[#allocation11 + $0x18] sm:$0xff] %v1467_v37 }
 0x23c   :  { %v1271_v39 = vpop.f32.mrb[8].mxu0 }
 0x23d   :  { %v1272_v41 = vpop.f32.mrb[9].mxu0 }
 0x23e   :  { %v1273_v42 = vadd.f32 %v1272_v41, %v1271_v39  ;;  %v1274_v43 = vpop.f32.mrb[10].mxu0 }
 0x23f   :  { %v1275_v44 = vpop.f32.mrb[11].mxu0 }
 0x240   :  { %v1098_v45 = vadd.f32 %v1273_v42, %v356_v40 }
 0x242   :  { %1468 = vtanh.f32 %v1098_v45 }
 0x24c   :  { %v1469_v46 = vpop.eup %1468 }
 0x24d   :  { %1116 = vst [vmem:[#allocation11 + $0x30] sm:$0xff] %v1469_v46 }
 0x25c   :  { %v1056_v51 = vpop.f32.mrb[4].mxu1 }
 0x25d   :  { %v1057_v52 = vadd.f32 %v1056_v51, %v348_v49  ;;  %v1058_v53 = vpop.f32.mrb[5].mxu1 }
 0x25e   :  { %v1059_v54 = vadd.f32 %v1058_v53, %v352_v50  ;;  %v1060_v55 = vpop.f32.mrb[6].mxu1 }
 0x25f   :  { %1470 = vtanh.f32 %v1057_v52  ;;  %v1061_v56 = vpop.f32.mrb[7].mxu1 }
 0x260   :  { %1472 = vtanh.f32 %v1059_v54 }
 0x269   :  { %v1471_v57 = vpop.eup %1470 }
 0x26a   :  { %v1473_v58 = vpop.eup %1472  ;;  %1114 = vst [vmem:[#allocation11 + $0x20] sm:$0xff] %v1471_v57 }
 0x26b   :  { %1115 = vst [vmem:[#allocation11 + $0x28] sm:$0xff] %v1473_v58 }
 0x26c   :  { %1595 = shalt.err (!%p1592_p2)
}
 0x26d   :  { %s1596_s6 = scalar_lea.hbm %s1755_s5, 896 }
 0x26e   :  { %p1597_p3 = scmp.ne.s32.totalorder %s1755_s5, %s1596_s6  ;;  %p1600_p4 = scmp.lt.u32.totalorder %s1596_s6, %s1755_s5 }
 0x270   :  { %p1602_p5 = pnand %p1600_p4, %p1597_p3 }
 0x272   :  { %1605 = shalt.err (!%p1602_p5)
}
 0x273   :  { %1126 = dma.vmem_to_hbm [thread:$0]  %s1124_s28, 896, %s1755_s5, [#allocation4]  }
 0x274   :  { %1612 = dma.done.wait [#allocation4], 896  }
 0x275   :  { %1613 = vsyncadd [#allocation4], 4294966400 }
 0x276   :  { %1130 = vsyncpa [#allocation3], 1 }
 0x277   :  { %1131 = vsyncpa [#allocation6], 1 }
 0x278   :  { %1132 = vsyncpa [#allocation9], 1 }
 0x279   :  { %1133 = vsyncpa [#allocation4], 1 }

</bundles_post_ra>
